<compile_context>
chip_gen: v6e
topology: v6e:2x2x1
jax: 0.10.0
libtpu: 0.0.40
codegen_flags: <defaults>
</compile_context>

<pallas_src>
import functools
import math

import jax
import jax.numpy as jnp
from jax.experimental import pallas as pl
from jax.experimental.pallas import tpu as pltpu


_MAX_ROW_TILE = 1024  # ~1.5 MiB f32 x-tile -> well under every VMEM budget


def _leaky_relu_02(x):
    return jnp.where(x > 0, x, 0.2 * x)


def _round_up(x, m):
    return m * ((x + m - 1) // m)


# --------------------------------------------------------------------------
# Kernel: fused  leaky_relu(leaky_relu(x @ W1 + b1) @ W2 + b2)
# --------------------------------------------------------------------------
def _two_stage_predictor_kernel(x_ref, w1_ref, b1_ref, w2_ref, b2_ref, o_ref):
    # Cast the activation tile to the weight dtype *inside* the kernel so the
    # wrapper never does a separate HBM read+write just to change precision.
    x = x_ref[...].astype(w1_ref.dtype)
    h = jnp.dot(x, w1_ref[...], preferred_element_type=jnp.float32)
    h = _leaky_relu_02(h + b1_ref[...])
    h = h.astype(w2_ref.dtype)
    y = jnp.dot(h, w2_ref[...], preferred_element_type=jnp.float32)
    y = _leaky_relu_02(y + b2_ref[...])
    o_ref[...] = y.astype(o_ref.dtype)


# --------------------------------------------------------------------------
# Hardware-aware configuration helpers
# --------------------------------------------------------------------------
@functools.lru_cache(maxsize=1)
def _tpu_config():
    """(num_tensorcores_per_device, vmem_cap_bytes) -- generation aware."""
    try:
        kind = jax.devices()[0].device_kind.lower()
    except Exception:  # pragma: no cover - defensive
        kind = ""
    num_cores = 2 if "v7" in kind else 1
    if ("v5e" in kind) or ("v5 lite" in kind) or ("v6" in kind):
        vmem_cap = 96 * 1024 * 1024        # 128 MiB physical on v5e/v6e
    else:
        vmem_cap = 48 * 1024 * 1024        # safe on v7x (64 MiB / TC)
    return num_cores, vmem_cap


def _plan_rows(n, row_align, num_cores):
    """Pick (padded_rows, row_tile) with padded_rows % row_tile == 0.

    Small/medium N: bucket to the next power of two (compile-cache friendly)
    and split across TensorCores when there are >= 2 aligned tiles.
    Large N: fixed 1024-row streaming tiles, grid depth a multiple of the
    core count so both v7x cores stay busy.
    """
    n_min = _round_up(max(n, 1), row_align)
    if n_min > 4096:
        row_tile = _MAX_ROW_TILE
        n_p = _round_up(n_min, row_tile * num_cores)
        return n_p, row_tile
    n_p = max(row_align, 1 << (n_min - 1).bit_length())      # power-of-two bucket
    row_tile = n_p
    if num_cores > 1 and n_p >= num_cores * row_align:
        row_tile = n_p // num_cores                           # shard rows across TCs
    while row_tile > _MAX_ROW_TILE:
        row_tile //= 2
    return n_p, row_tile


def _bspec(shape, index_map, buffers=None):
    """BlockSpec with an optional explicit buffer depth (graceful fallback)."""
    if buffers is not None and hasattr(pl, "Buffered"):
        try:
            return pl.BlockSpec(shape, index_map,
                                pipeline_mode=pl.Buffered(buffers))
        except TypeError:
            pass
    return pl.BlockSpec(shape, index_map)


# --------------------------------------------------------------------------
# One-time parameter preparation (pad to lane-dense 128 multiples, cast)
# --------------------------------------------------------------------------
def prepare_params(params, *, use_bf16=True):
    """Pad/cast classifier weights ONCE so the per-call path does no HBM
    passes besides the kernel itself. Zero padding is numerically neutral."""
    w1, b1, w2, b2 = params["w1"], params["b1"], params["w2"], params["b2"]
    input_dim, hidden_dim = w1.shape
    num_rel_cls = w2.shape[1]

    in_p = _round_up(input_dim, 128)
    hid_p = _round_up(hidden_dim, 128)
    out_p = _round_up(num_rel_cls, 128)

    if in_p != input_dim:
        w1 = jnp.pad(w1, ((0, in_p - input_dim), (0, 0)))
    if hid_p != hidden_dim:
        w1 = jnp.pad(w1, ((0, 0), (0, hid_p - hidden_dim)))
        b1 = jnp.pad(b1, (0, hid_p - hidden_dim))
        w2 = jnp.pad(w2, ((0, hid_p - hidden_dim), (0, 0)))
    if out_p != num_rel_cls:
        w2 = jnp.pad(w2, ((0, 0), (0, out_p - num_rel_cls)))
        b2 = jnp.pad(b2, (0, out_p - num_rel_cls))

    wdtype = jnp.bfloat16 if use_bf16 else jnp.float32
    return {
        "w1": jnp.asarray(w1, wdtype),
        "b1": jnp.asarray(b1, jnp.float32).reshape(1, hid_p),
        "w2": jnp.asarray(w2, wdtype),
        "b2": jnp.asarray(b2, jnp.float32).reshape(1, out_p),
        "input_dim": int(input_dim),
        "num_rel_cls": int(num_rel_cls),
    }


# --------------------------------------------------------------------------
# Jitted fused-MLP core on a row-padded, lane-dense input
# --------------------------------------------------------------------------
@functools.partial(jax.jit, static_argnames=("row_tile",))
def _fused_mlp_padded(x_p, w1, b1, w2, b2, *, row_tile):
    n_p, in_p = x_p.shape
    hid_p = w1.shape[1]
    out_p = w2.shape[1]
    grid_steps = n_p // row_tile
    x_bufs = 3 if grid_steps >= 4 else 2   # deeper buffering only when it helps

    num_cores, vmem_cap = _tpu_config()
    del num_cores  # row planning already used it

    x_bytes = jnp.dtype(x_p.dtype).itemsize
    w_bytes = jnp.dtype(w1.dtype).itemsize
    # Pessimistic footprint (weights counted double-buffered even though we
    # request Buffered(1)) so the explicit budget never under-counts.
    block_bytes = (
        x_bufs * row_tile * in_p * x_bytes
        + 2 * row_tile * out_p * 4
        + 2 * (in_p * hid_p * w_bytes + hid_p * 4)
        + 2 * (hid_p * out_p * w_bytes + out_p * 4)
    )
    vmem_limit = int(min(max(2 * block_bytes, 16 << 20), vmem_cap))

    return pl.pallas_call(
        _two_stage_predictor_kernel,
        # TODO(synk): could emit bf16 logits / defer the [:n, :51] slice to the
        # consumer to trim writeback bytes further; kept f32 for exactness.
        out_shape=jax.ShapeDtypeStruct((n_p, out_p), jnp.float32),
        grid_spec=pltpu.PrefetchScalarGridSpec(
            num_scalar_prefetch=0,
            grid=(grid_steps,),
            in_specs=[
                # streamed lane-dense row tile of the activations
                _bspec((row_tile, in_p), lambda i: (i, 0),
                       x_bufs if grid_steps >= 4 else None),
                # resident weights / biases (constant index map, single buffer)
                _bspec((in_p, hid_p), lambda i: (0, 0), 1),
                _bspec((1, hid_p), lambda i: (0, 0), 1),
                _bspec((hid_p, out_p), lambda i: (0, 0), 1),
                _bspec((1, out_p), lambda i: (0, 0), 1),
            ],
            out_specs=pl.BlockSpec((row_tile, out_p), lambda i: (i, 0)),
        ),
        compiler_params=pltpu.CompilerParams(
            dimension_semantics=("parallel",),
            vmem_limit_bytes=vmem_limit,
        ),
    )(x_p, w1, b1, w2, b2)


# --------------------------------------------------------------------------
# Public wrappers
# --------------------------------------------------------------------------
def two_stage_predictor_logits(rel_feats, prepared):
    """rel_feats: (N, input_dim). Returns (N, num_rel_cls) f32 logits."""
    n, d = rel_feats.shape
    assert d == prepared["input_dim"], "input_dim mismatch with prepared params"
    in_p = prepared["w1"].shape[0]
    num_rel_cls = prepared["num_rel_cls"]

    num_cores, _ = _tpu_config()
    # Sublane packing of the stored activation dtype (16 rows for bf16 inputs).
    row_align = 16 if jnp.dtype(rel_feats.dtype).itemsize < 4 else 8
    n_p, row_tile = _plan_rows(n, row_align, num_cores)

    pad_rows = n_p - n
    pad_lanes = in_p - d
    if pad_rows or pad_lanes:
        x_p = jnp.pad(rel_feats, ((0, pad_rows), (0, pad_lanes)))
    else:
        x_p = rel_feats

    out = _fused_mlp_padded(x_p, prepared["w1"], prepared["b1"],
                            prepared["w2"], prepared["b2"], row_tile=row_tile)
    return out[:n, :num_rel_cls]


def two_stage_predictor_forward(rel_feats, num_rels, prepared):
    """Fused MLP kernel + split by num_rels (mirrors torch .split(dim=0))."""
    logits = two_stage_predictor_logits(rel_feats, prepared)
    splits, start = [], 0
    for r in num_rels:
        splits.append(logits[start:start + r])
        start += r
    return tuple(splits)


def init_params(key, input_dim, hidden_dim, num_rel_cls, dtype=jnp.float32):
    """Synthetic init for the two classifier layers (nn.Linear shapes);
    weights stored pre-transposed as (in, out) so the kernel does x @ W + b."""
    k1, k2, k3, k4 = jax.random.split(key, 4)
    s1 = 1.0 / math.sqrt(input_dim)
    s2 = 1.0 / math.sqrt(hidden_dim)
    return {
        "w1": jax.random.uniform(k1, (input_dim, hidden_dim), dtype, -1.0, 1.0) * s1,
        "b1": jax.random.uniform(k2, (hidden_dim,), dtype, -1.0, 1.0) * s1,
        "w2": jax.random.uniform(k3, (hidden_dim, num_rel_cls), dtype, -1.0, 1.0) * s2,
        "b2": jax.random.uniform(k4, (num_rel_cls,), dtype, -1.0, 1.0) * s2,
    }


if __name__ == "__main__":
    # Config-consistent shapes:
    #   in_channels=32, word_dim=32, geometry_feat_dim=128
    #   -> input_dim = (32 + 32 + 128) * 2 = 384
    #   hidden_dim = 128, num_rel_cls = NUM_REL_GROUP + 1 = 51
    input_dim, hidden_dim, num_rel_cls = 384, 128, 51

    # Two "images": num_rels = [6, 10] -> 16 relation pairs total. The row
    # planner pads only to the sublane multiple (16 here), not to 256.
    num_rels = [6, 10]
    n_total = sum(num_rels)

    key = jax.random.PRNGKey(0)
    k_params, k_feats = jax.random.split(key)
    raw_params = init_params(k_params, input_dim, hidden_dim, num_rel_cls)
    rel_feats = jax.random.normal(k_feats, (n_total, input_dim), jnp.float32)

    # Pure-JAX reference (same semantics as the PyTorch forward).
    def leaky(x):
        return jnp.where(x > 0, x, 0.2 * x)

    ref = leaky(leaky(rel_feats @ raw_params["w1"] + raw_params["b1"])
                @ raw_params["w2"] + raw_params["b2"])

    # f32 path (bit-faithful to the PyTorch module).
    params_f32 = prepare_params(raw_params, use_bf16=False)
    out_f32 = two_stage_predictor_forward(rel_feats, num_rels, params_f32)
    out_f32 = jax.block_until_ready(out_f32)
    full = jnp.concatenate(out_f32, axis=0)
    assert full.shape == (n_total, num_rel_cls)
    assert out_f32[0].shape == (num_rels[0], num_rel_cls)
    assert out_f32[1].shape == (num_rels[1], num_rel_cls)
    assert jnp.allclose(full, ref, atol=1e-4, rtol=1e-4), float(
        jnp.max(jnp.abs(full - ref)))

    # bf16-weight fast path (default prepare_params; f32 MXU accumulation).
    params_bf16 = prepare_params(raw_params, use_bf16=True)
    out_bf16 = two_stage_predictor_forward(rel_feats, num_rels, params_bf16)
    bf16_full = jnp.concatenate(jax.block_until_ready(out_bf16), axis=0)
    assert jnp.allclose(bf16_full, ref, atol=5e-2, rtol=5e-2), float(
        jnp.max(jnp.abs(bf16_full - ref)))

    print("KERNEL_OK")
</pallas_src>

<mosaic_0001>
module attributes {stable_mosaic.version = 11 : i64} {
  func.func @_two_stage_predictor_kernel(%arg0: i32, %arg1: memref<16x384xf32, #tpu.memory_space<vmem>>, %arg2: memref<384x128xf32, #tpu.memory_space<vmem>>, %arg3: memref<1x128xf32, #tpu.memory_space<vmem>>, %arg4: memref<128x128xf32, #tpu.memory_space<vmem>>, %arg5: memref<1x128xf32, #tpu.memory_space<vmem>>, %arg6: memref<16x128xf32, #tpu.memory_space<vmem>>) attributes {dimension_semantics = [#tpu.dimension_semantics<parallel>], iteration_bounds = array<i64: 1>, scalar_prefetch = 0 : i64, scratch_operands = 0 : i64, tpu.core_type = #tpu.core_type<tc>, window_params = [{transform_indices = @transform_0, window_bounds = array<i64: 16, 384>}, {pipeline_mode = #tpu.pipeline_mode<synchronous>, transform_indices = @transform_1, window_bounds = array<i64: 384, 128>}, {pipeline_mode = #tpu.pipeline_mode<synchronous>, transform_indices = @transform_2, window_bounds = array<i64: 1, 128>}, {pipeline_mode = #tpu.pipeline_mode<synchronous>, transform_indices = @transform_3, window_bounds = array<i64: 128, 128>}, {pipeline_mode = #tpu.pipeline_mode<synchronous>, transform_indices = @transform_4, window_bounds = array<i64: 1, 128>}, {transform_indices = @transform_5, window_bounds = array<i64: 16, 128>}]} {
    %c0 = arith.constant 0 : index
    %c0_0 = arith.constant 0 : index
    %0 = vector.load %arg1[%c0, %c0_0] : memref<16x384xf32, #tpu.memory_space<vmem>>, vector<16x384xf32>
    %c0_1 = arith.constant 0 : index
    %c0_2 = arith.constant 0 : index
    %1 = vector.load %arg2[%c0_1, %c0_2] : memref<384x128xf32, #tpu.memory_space<vmem>>, vector<384x128xf32>
    %cst = arith.constant dense<0.000000e+00> : vector<16x128xf32>
    %2 = tpu.matmul %0, %1, %cst {dimension_numbers = #tpu.dot_dimension_numbers<[1], [0], [0], [1], [0, 0, 1, 1], [], []>} : vector<16x384xf32>, vector<384x128xf32>, vector<16x128xf32> -> vector<16x128xf32>
    %c0_3 = arith.constant 0 : index
    %c0_4 = arith.constant 0 : index
    %3 = vector.load %arg3[%c0_3, %c0_4] : memref<1x128xf32, #tpu.memory_space<vmem>>, vector<1x128xf32>
    %4 = vector.broadcast %3 : vector<1x128xf32> to vector<16x128xf32>
    %5 = arith.addf %2, %4 : vector<16x128xf32>
    %cst_5 = arith.constant 0.000000e+00 : f32
    %6 = vector.broadcast %cst_5 : f32 to vector<16x128xf32>
    %7 = arith.cmpf ogt, %5, %6 : vector<16x128xf32>
    %cst_6 = arith.constant 2.000000e-01 : f32
    %8 = vector.broadcast %cst_6 : f32 to vector<16x128xf32>
    %9 = arith.mulf %8, %5 : vector<16x128xf32>
    %10 = arith.select %7, %5, %9 : vector<16x128xi1>, vector<16x128xf32>
    %c0_7 = arith.constant 0 : index
    %c0_8 = arith.constant 0 : index
    %11 = vector.load %arg4[%c0_7, %c0_8] : memref<128x128xf32, #tpu.memory_space<vmem>>, vector<128x128xf32>
    %cst_9 = arith.constant dense<0.000000e+00> : vector<16x128xf32>
    %12 = tpu.matmul %10, %11, %cst_9 {dimension_numbers = #tpu.dot_dimension_numbers<[1], [0], [0], [1], [0, 0, 1, 1], [], []>} : vector<16x128xf32>, vector<128x128xf32>, vector<16x128xf32> -> vector<16x128xf32>
    %c0_10 = arith.constant 0 : index
    %c0_11 = arith.constant 0 : index
    %13 = vector.load %arg5[%c0_10, %c0_11] : memref<1x128xf32, #tpu.memory_space<vmem>>, vector<1x128xf32>
    %14 = vector.broadcast %13 : vector<1x128xf32> to vector<16x128xf32>
    %15 = arith.addf %12, %14 : vector<16x128xf32>
    %cst_12 = arith.constant 0.000000e+00 : f32
    %16 = vector.broadcast %cst_12 : f32 to vector<16x128xf32>
    %17 = arith.cmpf ogt, %15, %16 : vector<16x128xf32>
    %cst_13 = arith.constant 2.000000e-01 : f32
    %18 = vector.broadcast %cst_13 : f32 to vector<16x128xf32>
    %19 = arith.mulf %18, %15 : vector<16x128xf32>
    %20 = arith.select %17, %15, %19 : vector<16x128xi1>, vector<16x128xf32>
    %c0_14 = arith.constant 0 : index
    %c0_15 = arith.constant 0 : index
    %21 = vector.load %arg6[%c0_14, %c0_15] : memref<16x128xf32, #tpu.memory_space<vmem>>, vector<16x128xf32>
    tpu.vector_store %arg6[%c0_14, %c0_15], %20 {strides = array<i32>} : memref<16x128xf32, #tpu.memory_space<vmem>>, vector<16x128xf32>,
    return
  }
  func.func @transform_0(%arg0: i32) -> (i32, i32) {
    %c0_i32 = arith.constant 0 : i32
    %c0_i32_0 = arith.constant 0 : i32
    return %arg0, %c0_i32 : i32, i32
  }
  func.func @transform_1(%arg0: i32) -> (i32, i32) {
    %c0_i32 = arith.constant 0 : i32
    %c0_i32_0 = arith.constant 0 : i32
    %c0_i32_1 = arith.constant 0 : i32
    return %c0_i32, %c0_i32_0 : i32, i32
  }
  func.func @transform_2(%arg0: i32) -> (i32, i32) {
    %c0_i32 = arith.constant 0 : i32
    %c0_i32_0 = arith.constant 0 : i32
    %c0_i32_1 = arith.constant 0 : i32
    return %c0_i32, %c0_i32_0 : i32, i32
  }
  func.func @transform_3(%arg0: i32) -> (i32, i32) {
    %c0_i32 = arith.constant 0 : i32
    %c0_i32_0 = arith.constant 0 : i32
    %c0_i32_1 = arith.constant 0 : i32
    return %c0_i32, %c0_i32_0 : i32, i32
  }
  func.func @transform_4(%arg0: i32) -> (i32, i32) {
    %c0_i32 = arith.constant 0 : i32
    %c0_i32_0 = arith.constant 0 : i32
    %c0_i32_1 = arith.constant 0 : i32
    return %c0_i32, %c0_i32_0 : i32, i32
  }
  func.func @transform_5(%arg0: i32) -> (i32, i32) {
    %c0_i32 = arith.constant 0 : i32
    %c0_i32_0 = arith.constant 0 : i32
    return %arg0, %c0_i32 : i32, i32
  }
}

</mosaic_0001>

<bundles_post_ra>
// kernel: _fused_mlp_padded.1
= control target key start
LH: loop header
LB: loop body
LE: loop exit
PB: predicated region body
PF: predicated region fallthrough
CT: control target
= control target key end

     0   :  { %10 = vsyncpa [#allocation3], 0  ;;  %s708_s0 = inlined_call_operand.hbm [shape: f32[16,384], index: 0, kind: input, shape index: {}]   ;;  %s709_s1 = inlined_call_operand.hbm [shape: f32[384,128], index: 1, kind: input, shape index: {}]   ;;  %s710_s2 = inlined_call_operand.vmem [shape: f32[1,128], index: 2, kind: input, shape index: {}]   ;;  %s711_s3 = inlined_call_operand.hbm [shape: f32[128,128], index: 3, kind: input, shape index: {}]   ;;  %s712_s4 = inlined_call_operand.vmem [shape: f32[1,128], index: 4, kind: input, shape index: {}]   ;;  %s713_s5 = inlined_call_operand.hbm [shape: f32[16,128], index: 5, kind: output, shape index: {}]  }
   0x1   :  { %11 = vsyncpa [#allocation6], 0 }
   0x2   :  { %12 = vsyncpa [#allocation4], 0  ;;  %s643_s18 = smov [#allocation5]  }
   0x3   :  { %s30_s19 = sshll.u32 %s643_s18, 4  ;;  %s31_s19 = int_to_ptr.vmem [resolvable:$true] %s30_s19 }
   0x4   :  { %s565_s20 = scalar_lea.vmem %s31_s19, 6144  ;;  %p570_p1 = scmp.lt.s32.totalorder %s31_s19, %s31_s19 }
   0x5   :  { %p566_p0 = scmp.ne.s32.totalorder %s31_s19, %s565_s20  ;;  %p571_p2 = scmp.lt.s32.totalorder %s565_s20, %s565_s20 }
   0x7   :  { %p572_p3 = por %p571_p2, %p570_p1 }
   0x9   :  { %p573_p4 = pnand %p572_p3, %p566_p0 }
   0xb   :  { %576 = shalt.err (!%p573_p4)
}
   0xc   :  { %s644_s21 = smov 128   ;;  %s645_s22 = smov 8  }
   0xd   :  { %36 = dma.hbm_to_vmem [thread:$0]  %s709_s1, 6144, %s31_s19, [#allocation6], %s644_s21, %s644_s21, %s645_s22  }
   0xe   :  { %s646_s25 = smov [#allocation2]  }
   0xf   :  { %s18_s26 = sshll.u32 %s646_s25, 4  ;;  %s19_s26 = int_to_ptr.vmem [resolvable:$true] %s18_s26 }
  0x10   :  { %s585_s27 = scalar_lea.vmem %s19_s26, 768  ;;  %p590_p6 = scmp.lt.s32.totalorder %s19_s26, %s19_s26 }
  0x11   :  { %p586_p5 = scmp.ne.s32.totalorder %s19_s26, %s585_s27  ;;  %p591_p7 = scmp.lt.s32.totalorder %s585_s27, %s585_s27 }
  0x13   :  { %p592_p8 = por %p591_p7, %p590_p6 }
  0x15   :  { %p593_p9 = pnand %p592_p8, %p586_p5 }
  0x17   :  { %596 = shalt.err (!%p593_p9)
}
  0x18   :  { %s647_s28 = smov 384   ;;  %s648_s29 = smov 24  }
  0x19   :  { %24 = dma.hbm_to_vmem [thread:$0]  %s708_s0, 768, %s19_s26, [#allocation3], %s647_s28, %s647_s28, %s648_s29  }
  0x1a   :  { %s649_s7 = smov [#allocation7]  }
  0x1b   :  { %s44_s8 = sshll.u32 %s649_s7, 4  ;;  %s45_s8 = int_to_ptr.vmem [resolvable:$true] %s44_s8 }
  0x1c   :  { %s605_s1 = scalar_lea.vmem %s45_s8, 2048  ;;  %p610_p11 = scmp.lt.s32.totalorder %s45_s8, %s45_s8 }
  0x1d   :  { %p606_p10 = scmp.ne.s32.totalorder %s45_s8, %s605_s1  ;;  %p611_p12 = scmp.lt.s32.totalorder %s605_s1, %s605_s1 }
  0x1f   :  { %p612_p13 = por %p611_p12, %p610_p11 }
  0x21   :  { %p613_p0 = pnand %p612_p13, %p606_p10 }
  0x23   :  { %616 = shalt.err (!%p613_p0)
}
  0x24   :  { %50 = dma.hbm_to_vmem [thread:$0]  %s711_s3, 2048, %s45_s8, [#allocation6], %s644_s21, %s644_s21, %s645_s22  }
  0x25   :  { %637 = dma.done.wait [#allocation3], 768  }
  0x26   :  { %638 = vsyncadd [#allocation3], 4294966528 }
  0x27   :  { %639 = dma.done.wait [#allocation6], 8192  }
  0x28   :  { %640 = vsyncadd [#allocation6], 4294959104  ;;  %v99_v0 = vld [vmem:[#allocation5 + $0xf8] sm:$0xff]  ;;  %v98_v2 = vld [vmem:[#allocation5 + $0xf0] sm:$0xff]  ;;  %s650_s12 = smov [#allocation8]  }
  0x29   :  { %v83_v1 = vld [vmem:[#allocation5 + $0x78] sm:$0xff]  ;;  %405 = vmatprep.subr.mxu0 %v99_v0  ;;  %v82_v3 = vld [vmem:[#allocation5 + $0x70] sm:$0xff]  ;;  %v97_v5 = vld [vmem:[#allocation5 + $0xe8] sm:$0xff]  ;;  %s390_s13 = sshll.u32 %s650_s12, 4  ;;  %s391_s13 = int_to_ptr.vmem [resolvable:$true] %s390_s13 }
  0x2a   :  { %v115_v4 = vld [vmem:[#allocation5 + $0x178] sm:$0xff]  ;;  %406 = vmatpush3.msra.mxu0 %v83_v1  ;;  %v114_v6 = vld [vmem:[#allocation5 + $0x170] sm:$0xff]  ;;  %v81_v7 = vld [vmem:[#allocation5 + $0x68] sm:$0xff]  ;;  %s617_s14 = scalar_lea.vmem %s391_s13, 256  ;;  %p622_p2 = scmp.lt.s32.totalorder %s391_s13, %s391_s13 }
  0x2b   :  { %479 = vmatprep.subr.mxu1 %v115_v4  ;;  %407 = vmatprep.subr.mxu0 %v98_v2  ;;  %v113_v8 = vld [vmem:[#allocation5 + $0x168] sm:$0xff]  ;;  %v96_v9 = vld [vmem:[#allocation5 + $0xe0] sm:$0xff]  ;;  %v95_v12 = vld [vmem:[#allocation5 + $0xd8] sm:$0xff]  ;;  %p618_p1 = scmp.ne.s32.totalorder %s391_s13, %s617_s14  ;;  %p623_p3 = scmp.lt.s32.totalorder %s617_s14, %s617_s14 }
  0x2c   :  { %480 = vmatpush3.msra.mxu1 %v115_v4  ;;  %408 = vmatpush3.msra.mxu0 %v82_v3  ;;  %v80_v10 = vld [vmem:[#allocation5 + $0x60] sm:$0xff]  ;;  %v79_v13 = vld [vmem:[#allocation5 + $0x58] sm:$0xff]  ;;  %v94_v15 = vld [vmem:[#allocation5 + $0xd0] sm:$0xff] }
  0x2d   :  { %481 = vmatprep.subr.mxu1 %v114_v6  ;;  %409 = vmatprep.subr.mxu0 %v97_v5  ;;  %v112_v11 = vld [vmem:[#allocation5 + $0x160] sm:$0xff]  ;;  %v111_v14 = vld [vmem:[#allocation5 + $0x158] sm:$0xff]  ;;  %v78_v16 = vld [vmem:[#allocation5 + $0x50] sm:$0xff]  ;;  %p624_p4 = por %p623_p3, %p622_p2 }
  0x2e   :  { %482 = vmatpush3.msra.mxu1 %v114_v6  ;;  %410 = vmatpush3.msra.mxu0 %v81_v7  ;;  %v110_v17 = vld [vmem:[#allocation5 + $0x150] sm:$0xff]  ;;  %v93_v18 = vld [vmem:[#allocation5 + $0xc8] sm:$0xff]  ;;  %v92_v21 = vld [vmem:[#allocation5 + $0xc0] sm:$0xff] }
  0x2f   :  { %483 = vmatprep.subr.mxu1 %v113_v8  ;;  %411 = vmatprep.subr.mxu0 %v96_v9  ;;  %v77_v19 = vld [vmem:[#allocation5 + $0x48] sm:$0xff]  ;;  %v76_v22 = vld [vmem:[#allocation5 + $0x40] sm:$0xff]  ;;  %v91_v24 = vld [vmem:[#allocation5 + $0xb8] sm:$0xff]  ;;  %p625_p5 = pnand %p624_p4, %p618_p1 }
  0x30   :  { %484 = vmatpush3.msra.mxu1 %v113_v8  ;;  %412 = vmatpush3.msra.mxu0 %v80_v10  ;;  %v109_v20 = vld [vmem:[#allocation5 + $0x148] sm:$0xff]  ;;  %v108_v23 = vld [vmem:[#allocation5 + $0x140] sm:$0xff]  ;;  %v75_v25 = vld [vmem:[#allocation5 + $0x38] sm:$0xff] }
  0x31   :  { %485 = vmatprep.subr.mxu1 %v112_v11  ;;  %413 = vmatprep.subr.mxu0 %v95_v12  ;;  %v107_v26 = vld [vmem:[#allocation5 + $0x138] sm:$0xff]  ;;  %v90_v27 = vld [vmem:[#allocation5 + $0xb0] sm:$0xff]  ;;  %v89_v30 = vld [vmem:[#allocation5 + $0xa8] sm:$0xff] }
  0x32   :  { %486 = vmatpush3.msra.mxu1 %v112_v11  ;;  %414 = vmatpush3.msra.mxu0 %v79_v13  ;;  %v74_v28 = vld [vmem:[#allocation5 + $0x30] sm:$0xff]  ;;  %v73_v31 = vld [vmem:[#allocation5 + $0x28] sm:$0xff]  ;;  %v88_v33 = vld [vmem:[#allocation5 + $0xa0] sm:$0xff] }
  0x33   :  { %487 = vmatprep.subr.mxu1 %v111_v14  ;;  %415 = vmatprep.subr.mxu0 %v94_v15  ;;  %v106_v29 = vld [vmem:[#allocation5 + $0x130] sm:$0xff]  ;;  %v105_v32 = vld [vmem:[#allocation5 + $0x128] sm:$0xff]  ;;  %v72_v34 = vld [vmem:[#allocation5 + $0x20] sm:$0xff] }
  0x34   :  { %488 = vmatpush3.msra.mxu1 %v111_v14  ;;  %416 = vmatpush3.msra.mxu0 %v78_v16  ;;  %v104_v35 = vld [vmem:[#allocation5 + $0x120] sm:$0xff]  ;;  %v87_v36 = vld [vmem:[#allocation5 + $0x98] sm:$0xff]  ;;  %v86_v39 = vld [vmem:[#allocation5 + $0x90] sm:$0xff] }
  0x35   :  { %489 = vmatprep.subr.mxu1 %v110_v17  ;;  %417 = vmatprep.subr.mxu0 %v93_v18  ;;  %v71_v37 = vld [vmem:[#allocation5 + $0x18] sm:$0xff]  ;;  %v70_v40 = vld [vmem:[#allocation5 + $0x10] sm:$0xff]  ;;  %v85_v42 = vld [vmem:[#allocation5 + $0x88] sm:$0xff] }
  0x36   :  { %490 = vmatpush3.msra.mxu1 %v110_v17  ;;  %418 = vmatpush3.msra.mxu0 %v77_v19  ;;  %v103_v38 = vld [vmem:[#allocation5 + $0x118] sm:$0xff]  ;;  %v102_v41 = vld [vmem:[#allocation5 + $0x110] sm:$0xff]  ;;  %v69_v44 = vld [vmem:[#allocation5 + $0x8] sm:$0xff] }
  0x37   :  { %491 = vmatprep.subr.mxu1 %v109_v20  ;;  %419 = vmatprep.subr.mxu0 %v92_v21  ;;  %v63_v43 = vld [vmem:[#allocation2 + $0x8] sm:$0xff]  ;;  %v84_v45 = vld [vmem:[#allocation5 + $0x80] sm:$0xff]  ;;  %v101_v46 = vld [vmem:[#allocation5 + $0x108] sm:$0xff] }
  0x38   :  { %492 = vmatpush3.msra.mxu1 %v109_v20  ;;  %420 = vmatpush3.msra.mxu0 %v76_v22  ;;  %v68_v47 = vld [vmem:[#allocation5] sm:$0xff]  ;;  %v62_v48 = vld [vmem:[#allocation2] sm:$0xff]  ;;  %v294_v52 = vld [vmem:[#allocation7 + $0x78] sm:$0xff] }
  0x39   :  { %493 = vmatprep.subr.mxu1 %v108_v23  ;;  %421 = vmatprep.subr.mxu0 %v91_v24  ;;  %v100_v49 = vld [vmem:[#allocation5 + $0x100] sm:$0xff]  ;;  %v66_v50 = vld [vmem:[#allocation2 + $0x20] sm:$0xff]  ;;  %v67_v53 = vld [vmem:[#allocation2 + $0x28] sm:$0xff] }
  0x3a   :  { %494 = vmatpush3.msra.mxu1 %v108_v23  ;;  %422 = vmatpush3.msra.mxu0 %v75_v25  ;;  %v64_v51 = vld [vmem:[#allocation2 + $0x10] sm:$0xff]  ;;  %v65_v54 = vld [vmem:[#allocation2 + $0x18] sm:$0xff]  ;;  %v293_v55 = vld [vmem:[#allocation7 + $0x70] sm:$0xff] }
  0x3b   :  { %495 = vmatprep.subr.mxu1 %v107_v26  ;;  %423 = vmatprep.subr.mxu0 %v90_v27  ;;  %v292_v56 = vld [vmem:[#allocation7 + $0x68] sm:$0xff]  ;;  %v291_v57 = vld [vmem:[#allocation7 + $0x60] sm:$0xff]  ;;  %v290_v58 = vld [vmem:[#allocation7 + $0x58] sm:$0xff] }
  0x3c   :  { %496 = vmatpush3.msra.mxu1 %v107_v26  ;;  %424 = vmatpush3.msra.mxu0 %v74_v28  ;;  %v289_v59 = vld [vmem:[#allocation7 + $0x50] sm:$0xff]  ;;  %v288_v60 = vld [vmem:[#allocation7 + $0x48] sm:$0xff]  ;;  %v287_v61 = vld [vmem:[#allocation7 + $0x40] sm:$0xff] }
  0x3d   :  { %497 = vmatprep.subr.mxu1 %v106_v29  ;;  %425 = vmatprep.subr.mxu0 %v89_v30  ;;  %v286_v62 = vld [vmem:[#allocation7 + $0x38] sm:$0xff]  ;;  %v285_v63 = vld [vmem:[#allocation7 + $0x30] sm:$0xff]  ;;  %v284_v0 = vld [vmem:[#allocation7 + $0x28] sm:$0xff] }
  0x3e   :  { %498 = vmatpush3.msra.mxu1 %v106_v29  ;;  %426 = vmatpush3.msra.mxu0 %v73_v31  ;;  %v283_v1 = vld [vmem:[#allocation7 + $0x20] sm:$0xff]  ;;  %v282_v2 = vld [vmem:[#allocation7 + $0x18] sm:$0xff]  ;;  %v281_v3 = vld [vmem:[#allocation7 + $0x10] sm:$0xff] }
  0x3f   :  { %499 = vmatprep.subr.mxu1 %v105_v32  ;;  %427 = vmatprep.subr.mxu0 %v88_v33  ;;  %v280_v4 = vld [vmem:[#allocation7 + $0x8] sm:$0xff]  ;;  %v279_v5 = vld [vmem:[#allocation7] sm:$0xff]  ;;  %v403_v8 = vld [vmem:[%s710_s2] ss:$0 sm:$0xff] }
  0x40   :  { %500 = vmatpush3.msra.mxu1 %v105_v32  ;;  %428 = vmatpush3.msra.mxu0 %v72_v34  ;;  %v404_v23 = vld [vmem:[%s712_s4] ss:$0 sm:$0xff] }
  0x41   :  { %501 = vmatprep.subr.mxu1 %v104_v35  ;;  %429 = vmatprep.subr.mxu0 %v87_v36 }
  0x42   :  { %502 = vmatpush3.msra.mxu1 %v104_v35  ;;  %430 = vmatpush3.msra.mxu0 %v71_v37 }
  0x43   :  { %503 = vmatprep.subr.mxu1 %v103_v38  ;;  %431 = vmatprep.subr.mxu0 %v86_v39 }
  0x44   :  { %504 = vmatpush3.msra.mxu1 %v103_v38  ;;  %432 = vmatpush3.msra.mxu0 %v70_v40 }
  0x45   :  { %505 = vmatprep.subr.mxu1 %v102_v41  ;;  %433 = vmatprep.subr.mxu0 %v85_v42 }
  0x46   :  { %187 = vmatprep.mubr.f32.mxu0 %v63_v43  ;;  %434 = vmatpush3.msra.mxu0 %v69_v44 }
  0x47   :  { %506 = vmatpush3.msra.mxu1 %v102_v41  ;;  %435 = vmatprep.subr.mxu0 %v84_v45 }
  0x48   :  { %507 = vmatprep.subr.mxu1 %v101_v46  ;;  %436 = vmatpush3.msra.mxu0 %v68_v47 }
  0x49   :  { %508 = vmatpush3.msra.mxu1 %v101_v46  ;;  %188 = vmatmul.mubr.f32.vlgmr.msra.gmra.mxu0 %v62_v48 }
  0x4a   :  { %509 = vmatprep.subr.mxu1 %v100_v49  ;;  %192 = vmatprep.mubr.f32.mxu0 %v66_v50 }
  0x4b   :  { %510 = vmatpush3.msra.mxu1 %v100_v49  ;;  %511 = vmatprep.mubr.f32.mxu1 %v64_v51 }
  0x4c   :  { %514 = vmatprep.subr.mxu0 %v294_v52  ;;  %512 = vmatmul.mubr.f32.vlgmr.msra.gmra.mxu1 %v67_v53 }
  0x4d   :  { %515 = vmatpush3.msra.mxu0 %v294_v52 }
  0x4e   :  { %193 = vmatmul.mubr.f32.gmra.mxu0 %v65_v54  ;;  %516 = vmatprep.subr.mxu0 %v293_v55 }
  0x4f   :  { %517 = vmatpush3.msra.mxu0 %v293_v55 }
  0x50   :  { %518 = vmatprep.subr.mxu0 %v292_v56 }
  0x51   :  { %519 = vmatpush3.msra.mxu0 %v292_v56 }
  0x52   :  { %520 = vmatprep.subr.mxu0 %v291_v57 }
  0x53   :  { %521 = vmatpush3.msra.mxu0 %v291_v57 }
  0x54   :  { %522 = vmatprep.subr.mxu0 %v290_v58 }
  0x55   :  { %523 = vmatpush3.msra.mxu0 %v290_v58 }
  0x56   :  { %524 = vmatprep.subr.mxu0 %v289_v59 }
  0x57   :  { %525 = vmatpush3.msra.mxu0 %v289_v59 }
  0x58   :  { %526 = vmatprep.subr.mxu0 %v288_v60 }
  0x59   :  { %527 = vmatpush3.msra.mxu0 %v288_v60 }
  0x5a   :  { %528 = vmatprep.subr.mxu0 %v287_v61 }
  0x5b   :  { %529 = vmatpush3.msra.mxu0 %v287_v61 }
  0x5c   :  { %530 = vmatprep.subr.mxu0 %v286_v62 }
  0x5d   :  { %531 = vmatpush3.msra.mxu0 %v286_v62 }
  0x5e   :  { %532 = vmatprep.subr.mxu0 %v285_v63 }
  0x5f   :  { %533 = vmatpush3.msra.mxu0 %v285_v63 }
  0x60   :  { %534 = vmatprep.subr.mxu0 %v284_v0 }
  0x61   :  { %535 = vmatpush3.msra.mxu0 %v284_v0 }
  0x62   :  { %536 = vmatprep.subr.mxu0 %v283_v1 }
  0x63   :  { %537 = vmatpush3.msra.mxu0 %v283_v1 }
  0x64   :  { %538 = vmatprep.subr.mxu0 %v282_v2 }
  0x65   :  { %539 = vmatpush3.msra.mxu0 %v282_v2 }
  0x66   :  { %540 = vmatprep.subr.mxu0 %v281_v3 }
  0x67   :  { %541 = vmatpush3.msra.mxu0 %v281_v3 }
  0x68   :  { %542 = vmatprep.subr.mxu0 %v280_v4 }
  0x69   :  { %543 = vmatpush3.msra.mxu0 %v280_v4 }
  0x6a   :  { %544 = vmatprep.subr.mxu0 %v279_v5 }
  0x6b   :  { %545 = vmatpush3.msra.mxu0 %v279_v5 }
 0x109   :  { %v437_v6 = vpop.f32.mrf.mxu0 }
 0x10b   :  { %v438_v7 = vpop.f32.mrf.mxu0 }
 0x10c   :  { %v439_v9 = vadd.f32 %v438_v7, %v437_v6  ;;  %v513_v10 = vpop.f32.mrf.mxu1 }
 0x10e   :  { %v440_v11 = vpop.f32.mrf.mxu0  ;;  %v190_v12 = vadd.f32 %v439_v9, %v403_v8  ;;  %v264_v13 = vpop.f32.mrf.mxu1 }
 0x110   :  { %v441_v14 = vpop.f32.mrf.mxu0  ;;  %v265_v16 = vadd.f32 %v264_v13, %v190_v12 }
 0x111   :  { %v442_v15 = vadd.f32 %v441_v14, %v440_v11 }
 0x112   :  { %v275_v18 = vmul.f32 0.2, %v265_v16  ;;  %vm273_vm0 = vcmp.gt.f32.partialorder %v265_v16, 0.0 }
 0x113   :  { %v195_v17 = vadd.f32 %v442_v15, %v403_v8 }
 0x114   :  { %v277_v20 = vsel %vm273_vm0, %v265_v16, %v275_v18 }
 0x115   :  { %v270_v19 = vadd.f32 %v513_v10, %v195_v17  ;;  %546 = vmatprep.mubr.f32.mxu0 %v277_v20 }
 0x117   :  { %v276_v21 = vmul.f32 0.2, %v270_v19  ;;  %vm274_vm1 = vcmp.gt.f32.partialorder %v270_v19, 0.0 }
 0x119   :  { %v278_v22 = vsel %vm274_vm1, %v270_v19, %v276_v21 }
 0x11a   :  { %547 = vmatmul.mubr.f32.vlgmr.msra.gmra.mxu0 %v278_v22 }
 0x1da   :  { %v548_v24 = vpop.f32.mrf.mxu0 }
 0x1db   :  { %v374_v25 = vadd.f32 %v548_v24, %v404_v23 }
 0x1dc   :  { %v368_v26 = vpop.f32.mrf.mxu0 }
 0x1dd   :  { %vm378_vm2 = vcmp.gt.f32.partialorder %v374_v25, 0.0  ;;  %v380_v27 = vmul.f32 0.2, %v374_v25  ;;  %v369_v28 = vadd.f32 %v404_v23, %v368_v26 }
 0x1df   :  { %vm377_vm3 = vcmp.gt.f32.partialorder %v369_v28, 0.0  ;;  %v379_v29 = vmul.f32 0.2, %v369_v28  ;;  %v382_v30 = vsel %vm378_vm2, %v374_v25, %v380_v27 }
 0x1e0   :  { %384 = vst [vmem:[#allocation8 + $0x8] sm:$0xff] %v382_v30 }
 0x1e1   :  { %v381_v31 = vsel %vm377_vm3, %v369_v28, %v379_v29 }
 0x1e2   :  { %383 = vst [vmem:[#allocation8] sm:$0xff] %v381_v31 }
 0x1e3   :  { %628 = shalt.err (!%p625_p5)
}
 0x1e4   :  { %396 = dma.vmem_to_hbm [thread:$0]  %s391_s13, 256, %s713_s5, [#allocation4], %s644_s21, %s644_s21, %s645_s22  }
 0x1e5   :  { %641 = dma.done.wait [#allocation4], 256  }
 0x1e6   :  { %642 = vsyncadd [#allocation4], 4294967040 }
 0x1e7   :  { %400 = vsyncpa [#allocation3], 1 }
 0x1e8   :  { %401 = vsyncpa [#allocation6], 1 }
 0x1e9   :  { %402 = vsyncpa [#allocation4], 1 }

</bundles_post_ra>
